<compile_context>
chip_gen: v7x
topology: tpu7x:2x2x1
jax: 0.10.0
libtpu: 0.0.40
codegen_flags: <defaults>
</compile_context>

<pallas_src>
import functools

import jax
import jax.numpy as jnp
import numpy as np
from jax.experimental import pallas as pl
from jax.experimental.pallas import tpu as pltpu


def _round_up(v, m):
    return (v + m - 1) // m * m


def _reflect_pad_nchw(x, p):
    return jnp.pad(x, ((0, 0), (0, 0), (p, p), (p, p)), mode="reflect")


# ---------------------------------------------------------------------------
# Kernel bodies
# ---------------------------------------------------------------------------
def _conv_instance_norm(xp_ref, w_ref, *, offs_by_kh, l_pad, wp, w_img,
                        l_out, inv_hw, eps):
    """3x3 conv (3 bf16 dots over lane-sliced taps) + masked InstanceNorm.

    xp_ref : (1, C_pad, Lin_pad) bf16  -- flattened reflection-padded slab.
    w_ref  : (3, tile_co, 3*C_pad) bf16 -- kh-major, column = kw*C_pad + ci.
    Returns (tile_co, l_pad) f32, instance-normalised over the valid lanes.
    """
    xp = xp_ref[0]                                        # (C_pad, Lin_pad) bf16
    z = None
    for kh in range(3):                                   # static unroll, 3 dots
        taps = jnp.concatenate(
            [xp[:, o:o + l_pad] for o in offs_by_kh[kh]], axis=0)
        part = jnp.dot(w_ref[kh], taps, preferred_element_type=jnp.float32)
        z = part if z is None else z + part               # (tile_co, l_pad) f32

    # Valid-lane mask built in-kernel (no HBM mask stream).  Row index is
    # recovered with exact float math (values << 2^24, margin 0.5/wp), so we
    # never rely on vector integer div/rem support.
    col_i = jax.lax.broadcasted_iota(jnp.int32, (1, l_pad), 1)
    col = col_i.astype(jnp.float32)
    row = jnp.floor((col + 0.5) * (1.0 / wp))
    j = col - row * wp
    valid = jnp.logical_and(j < w_img, col_i < l_out)     # (1, l_pad) bool

    # Two-pass stats: mean first, then centred variance (no E[z^2] - mean^2
    # cancellation).  rsqrt goes to the EUP.
    zm = jnp.where(valid, z, 0.0)
    mean = jnp.sum(zm, axis=1, keepdims=True) * inv_hw
    zc = z - mean
    var = jnp.sum(jnp.where(valid, zc * zc, 0.0), axis=1, keepdims=True) * inv_hw
    return zc * jax.lax.rsqrt(var + eps)


def _stage1_kernel(xp_ref, w_ref, o_ref, **kw):
    """ReflPad(dil) [glue] -> Conv3x3(dil) -> InstanceNorm -> ReLU (bf16 out)."""
    y = _conv_instance_norm(xp_ref, w_ref, **kw)
    o_ref[0] = jnp.maximum(y, 0.0).astype(o_ref.dtype)


def _stage2_kernel(xp_ref, w_ref, xres_ref, o_ref, **kw):
    """ReflPad(1) [glue] -> Conv3x3 -> InstanceNorm -> + residual x (f32 out)."""
    y = _conv_instance_norm(xp_ref, w_ref, **kw)
    o_ref[0] = (xres_ref[0] + y).astype(o_ref.dtype)


# ---------------------------------------------------------------------------
# JAX glue
# ---------------------------------------------------------------------------
def resnet_block_forward(x, w1, b1, w2, b2, dilation):
    # Conv bias is a mathematical no-op under InstanceNorm2d(affine=False):
    # it shifts the per-channel spatial mean by exactly the bias, which the
    # norm subtracts -> dropped.
    del b1, b2

    n, c, h, w = x.shape
    c_pad = _round_up(max(c, 16), 16)       # bf16 native (16,128) sublane tile
    eps = 1e-5
    inv_hw = 1.0 / float(h * w)

    # Output-channel tile (parallel grid axis; exact because IN stats are
    # per-channel).  Keeps the per-step working set small enough for v7x.
    if c_pad <= 256:
        tile_co = c_pad
    else:
        tile_co = max(t for t in (256, 128, 64, 32, 16) if c_pad % t == 0)
    n_co = c_pad // tile_co

    def pack_weights(wgt):
        # (C_out,C_in,3,3) -> (3, C_pad, 3*C_pad) bf16; [kh, co, kw*C_pad+ci].
        wz = jnp.zeros((c_pad, c_pad, 3, 3), jnp.float32).at[:c, :c].set(wgt)
        return (jnp.transpose(wz, (2, 0, 3, 1))
                .reshape(3, c_pad, 3 * c_pad).astype(jnp.bfloat16))

    def pad_channels(a):
        return jnp.pad(a, ((0, 0), (0, c_pad - a.shape[1]), (0, 0), (0, 0)))

    def stage_geometry(dil):
        wp = w + 2 * dil                    # padded-grid row stride
        hp = h + 2 * dil
        l_out = h * wp                      # conv output on the padded grid
        l_pad = _round_up(l_out, 128)       # lane-dense output width
        max_off = 2 * dil * wp + 2 * dil
        lin_pad = _round_up(max(max_off + l_pad, hp * wp), 128)
        offs = tuple(tuple(kh * dil * wp + kw * dil for kw in range(3))
                     for kh in range(3))
        return wp, l_out, l_pad, lin_pad, offs

    def flatten_padded_bf16(xp4, lin_pad):
        n_, cc, hp_, wpp = xp4.shape
        flat = xp4.astype(jnp.bfloat16).reshape(n_, cc, hp_ * wpp)
        return jnp.pad(flat, ((0, 0), (0, 0), (0, lin_pad - hp_ * wpp)))

    def working_set_bytes(lin_pad, l_pad, with_res):
        slab = 2 * c_pad * lin_pad * 2                 # double-buffered slab
        wts = 2 * 3 * tile_co * 3 * c_pad * 2
        outb = 2 * tile_co * l_pad * (4 if with_res else 2)
        res = 2 * tile_co * l_pad * 4 if with_res else 0
        tmp = 3 * c_pad * l_pad * 2 + 3 * tile_co * l_pad * 4
        return slab + wts + outb + res + tmp

    def vmem_limit(ws):
        phys = 64 * 1024 * 1024             # conservative default (v7x per-TC)
        try:
            phys = int(pltpu.get_tpu_info().vmem_capacity_bytes)
        except Exception:
            pass
        want = max(int(ws * 3 // 2), 32 * 1024 * 1024)
        return int(min(want, phys * 3 // 4))

    def compiler_params(ws):
        return pltpu.CompilerParams(
            dimension_semantics=("parallel", "parallel"),
            vmem_limit_bytes=vmem_limit(ws))

    xc = pad_channels(x)                    # (N, C_pad, H, W) f32
    w1p = pack_weights(w1)
    w2p = pack_weights(w2)

    # ------------- stage 1: pad(dil) -> conv(dil) -> IN -> ReLU -------------
    wp1, l1, l1p, lin1, offs1 = stage_geometry(dilation)
    xp1f = flatten_padded_bf16(_reflect_pad_nchw(xc, dilation), lin1)

    ce1 = pl.CostEstimate(
        flops=2 * n * c_pad * 9 * c_pad * l1p,
        transcendentals=n * c_pad,
        bytes_accessed=int(n * n_co * c_pad * lin1 * 2 + n * w1p.size * 2
                           + n * c_pad * l1p * 2))
    h1 = pl.pallas_call(
        functools.partial(_stage1_kernel, offs_by_kh=offs1, l_pad=l1p,
                          wp=wp1, w_img=w, l_out=l1, inv_hw=inv_hw, eps=eps),
        out_shape=jax.ShapeDtypeStruct((n, c_pad, l1p), jnp.bfloat16),
        grid_spec=pltpu.PrefetchScalarGridSpec(
            num_scalar_prefetch=0,
            grid=(n, n_co),
            in_specs=[
                pl.BlockSpec((1, c_pad, lin1), lambda b, co: (b, 0, 0)),
                pl.BlockSpec((3, tile_co, 3 * c_pad), lambda b, co: (0, co, 0)),
            ],
            out_specs=pl.BlockSpec((1, tile_co, l1p), lambda b, co: (b, co, 0)),
        ),
        compiler_params=compiler_params(working_set_bytes(lin1, l1p, False)),
        cost_estimate=ce1,
    )(xp1f, w1p)

    # Drop seam/pad lanes; reflection-pad the compact bf16 intermediate.
    h1_grid = h1[:, :, :l1].reshape(n, c_pad, h, wp1)[:, :, :, :w]

    # ------------- stage 2: pad(1) -> conv -> IN -> + x ---------------------
    wp2, l2, l2p, lin2, offs2 = stage_geometry(1)
    xp2f = flatten_padded_bf16(_reflect_pad_nchw(h1_grid, 1), lin2)
    # Residual x on the stage-2 padded grid, lane-padded to l2p (kept f32).
    xresf = jnp.pad(
        jnp.pad(xc, ((0, 0), (0, 0), (0, 0), (0, wp2 - w))).reshape(n, c_pad, l2),
        ((0, 0), (0, 0), (0, l2p - l2)))

    ce2 = pl.CostEstimate(
        flops=2 * n * c_pad * 9 * c_pad * l2p,
        transcendentals=n * c_pad,
        bytes_accessed=int(n * n_co * c_pad * lin2 * 2 + n * w2p.size * 2
                           + n * c_pad * l2p * 8))
    out = pl.pallas_call(
        functools.partial(_stage2_kernel, offs_by_kh=offs2, l_pad=l2p,
                          wp=wp2, w_img=w, l_out=l2, inv_hw=inv_hw, eps=eps),
        out_shape=jax.ShapeDtypeStruct((n, c_pad, l2p), jnp.float32),
        grid_spec=pltpu.PrefetchScalarGridSpec(
            num_scalar_prefetch=0,
            grid=(n, n_co),
            in_specs=[
                pl.BlockSpec((1, c_pad, lin2), lambda b, co: (b, 0, 0)),
                pl.BlockSpec((3, tile_co, 3 * c_pad), lambda b, co: (0, co, 0)),
                pl.BlockSpec((1, tile_co, l2p), lambda b, co: (b, co, 0)),
            ],
            out_specs=pl.BlockSpec((1, tile_co, l2p), lambda b, co: (b, co, 0)),
        ),
        compiler_params=compiler_params(working_set_bytes(lin2, l2p, True)),
        cost_estimate=ce2,
    )(xp2f, w2p, xresf)

    return out[:, :, :l2].reshape(n, c_pad, h, wp2)[:, :c, :, :w]


# ---------------------------------------------------------------------------
# Pure-JAX reference (mirrors the PyTorch module semantics)
# ---------------------------------------------------------------------------
def resnet_block_reference(x, w1, b1, w2, b2, dilation,
                           matmul_dtype=jnp.float32):
    def conv(xp, wgt, bias, dil):
        y = jax.lax.conv_general_dilated(
            xp.astype(matmul_dtype), wgt.astype(matmul_dtype),
            window_strides=(1, 1), padding="VALID", rhs_dilation=(dil, dil),
            dimension_numbers=("NCHW", "OIHW", "NCHW"),
            preferred_element_type=jnp.float32,
            precision=jax.lax.Precision.HIGHEST,
        )
        return y + bias[None, :, None, None]

    def inorm(y, eps=1e-5):
        mean = jnp.mean(y, axis=(2, 3), keepdims=True)
        var = jnp.mean((y - mean) ** 2, axis=(2, 3), keepdims=True)
        return (y - mean) * jax.lax.rsqrt(var + eps)

    h1 = jnp.maximum(
        inorm(conv(_reflect_pad_nchw(x, dilation), w1, b1, dilation)), 0.0)
    out = inorm(conv(_reflect_pad_nchw(h1, 1), w2, b2, 1))
    return x + out


# ---------------------------------------------------------------------------
if __name__ == "__main__":
    N, DIM, H, W = 2, 4, 16, 16
    DILATION = 2

    key = jax.random.PRNGKey(0)
    kx, kw1, kb1, kw2, kb2 = jax.random.split(key, 5)
    x = jax.random.normal(kx, (N, DIM, H, W), jnp.float32)
    w1 = 0.1 * jax.random.normal(kw1, (DIM, DIM, 3, 3), jnp.float32)
    b1 = 0.05 * jax.random.normal(kb1, (DIM,), jnp.float32)
    w2 = 0.1 * jax.random.normal(kw2, (DIM, DIM, 3, 3), jnp.float32)
    b2 = 0.05 * jax.random.normal(kb2, (DIM,), jnp.float32)

    fwd = jax.jit(functools.partial(resnet_block_forward, dilation=DILATION))
    out = jax.block_until_ready(fwd(x, w1, b1, w2, b2))

    # Tight check vs. a reference using the same bf16 matmul operands.
    ref_bf16 = jax.block_until_ready(
        resnet_block_reference(x, w1, b1, w2, b2, DILATION,
                               matmul_dtype=jnp.bfloat16))
    np.testing.assert_allclose(np.asarray(out), np.asarray(ref_bf16),
                               rtol=5e-3, atol=5e-3)

    # Looser semantic check vs. the full-f32 reference (module ground truth).
    ref_f32 = jax.block_until_ready(
        resnet_block_reference(x, w1, b1, w2, b2, DILATION,
                               matmul_dtype=jnp.float32))
    np.testing.assert_allclose(np.asarray(out), np.asarray(ref_f32),
                               rtol=3e-2, atol=3e-2)

    print("KERNEL_OK")
</pallas_src>

<mosaic_0001>
module attributes {stable_mosaic.version = 11 : i64} {
  func.func @_stage1_kernel(%arg0: i32, %arg1: i32, %arg2: memref<1x16x512xbf16, #tpu.memory_space<vmem>>, %arg3: memref<3x16x48xbf16, #tpu.memory_space<vmem>>, %arg4: memref<1x16x384xbf16, #tpu.memory_space<vmem>>) attributes {dimension_semantics = [#tpu.dimension_semantics<parallel>, #tpu.dimension_semantics<parallel>], iteration_bounds = array<i64: 2, 1>, scalar_prefetch = 0 : i64, scratch_operands = 0 : i64, tpu.core_type = #tpu.core_type<tc>, window_params = [{transform_indices = @transform_0, window_bounds = array<i64: 1, 16, 512>}, {transform_indices = @transform_1, window_bounds = array<i64: 3, 16, 48>}, {transform_indices = @transform_2, window_bounds = array<i64: 1, 16, 384>}]} {
    %c0 = arith.constant 0 : index
    %c0_0 = arith.constant 0 : index
    %c0_1 = arith.constant 0 : index
    %0 = vector.load %arg2[%c0, %c0_0, %c0_1] : memref<1x16x512xbf16, #tpu.memory_space<vmem>>, vector<1x16x512xbf16>
    %1 = vector.shape_cast %0 : vector<1x16x512xbf16> to vector<16x512xbf16>
    %2 = vector.extract_strided_slice %1 {offsets = [0, 0], sizes = [16, 384], strides = [1, 1]} : vector<16x512xbf16> to vector<16x384xbf16>
    %3 = vector.extract_strided_slice %1 {offsets = [0, 2], sizes = [16, 384], strides = [1, 1]} : vector<16x512xbf16> to vector<16x384xbf16>
    %4 = vector.extract_strided_slice %1 {offsets = [0, 4], sizes = [16, 384], strides = [1, 1]} : vector<16x512xbf16> to vector<16x384xbf16>
    %5 = tpu.concatenate %2, %3, %4 in 0 : vector<16x384xbf16>, vector<16x384xbf16>, vector<16x384xbf16> -> vector<48x384xbf16>
    %c0_2 = arith.constant 0 : index
    %c0_3 = arith.constant 0 : index
    %c0_4 = arith.constant 0 : index
    %6 = vector.load %arg3[%c0_2, %c0_3, %c0_4] : memref<3x16x48xbf16, #tpu.memory_space<vmem>>, vector<1x16x48xbf16>
    %7 = vector.shape_cast %6 : vector<1x16x48xbf16> to vector<16x48xbf16>
    %cst = arith.constant dense<0.000000e+00> : vector<16x384xf32>
    %8 = tpu.matmul %7, %5, %cst {dimension_numbers = #tpu.dot_dimension_numbers<[1], [0], [0], [1], [0, 0, 1, 1], [], []>} : vector<16x48xbf16>, vector<48x384xbf16>, vector<16x384xf32> -> vector<16x384xf32>
    %9 = vector.extract_strided_slice %1 {offsets = [0, 40], sizes = [16, 384], strides = [1, 1]} : vector<16x512xbf16> to vector<16x384xbf16>
    %10 = vector.extract_strided_slice %1 {offsets = [0, 42], sizes = [16, 384], strides = [1, 1]} : vector<16x512xbf16> to vector<16x384xbf16>
    %11 = vector.extract_strided_slice %1 {offsets = [0, 44], sizes = [16, 384], strides = [1, 1]} : vector<16x512xbf16> to vector<16x384xbf16>
    %12 = tpu.concatenate %9, %10, %11 in 0 : vector<16x384xbf16>, vector<16x384xbf16>, vector<16x384xbf16> -> vector<48x384xbf16>
    %c1 = arith.constant 1 : index
    %c0_5 = arith.constant 0 : index
    %c0_6 = arith.constant 0 : index
    %13 = vector.load %arg3[%c1, %c0_5, %c0_6] : memref<3x16x48xbf16, #tpu.memory_space<vmem>>, vector<1x16x48xbf16>
    %14 = vector.shape_cast %13 : vector<1x16x48xbf16> to vector<16x48xbf16>
    %cst_7 = arith.constant dense<0.000000e+00> : vector<16x384xf32>
    %15 = tpu.matmul %14, %12, %cst_7 {dimension_numbers = #tpu.dot_dimension_numbers<[1], [0], [0], [1], [0, 0, 1, 1], [], []>} : vector<16x48xbf16>, vector<48x384xbf16>, vector<16x384xf32> -> vector<16x384xf32>
    %16 = arith.addf %8, %15 : vector<16x384xf32>
    %17 = vector.extract_strided_slice %1 {offsets = [0, 80], sizes = [16, 384], strides = [1, 1]} : vector<16x512xbf16> to vector<16x384xbf16>
    %18 = vector.extract_strided_slice %1 {offsets = [0, 82], sizes = [16, 384], strides = [1, 1]} : vector<16x512xbf16> to vector<16x384xbf16>
    %19 = vector.extract_strided_slice %1 {offsets = [0, 84], sizes = [16, 384], strides = [1, 1]} : vector<16x512xbf16> to vector<16x384xbf16>
    %20 = tpu.concatenate %17, %18, %19 in 0 : vector<16x384xbf16>, vector<16x384xbf16>, vector<16x384xbf16> -> vector<48x384xbf16>
    %c2 = arith.constant 2 : index
    %c0_8 = arith.constant 0 : index
    %c0_9 = arith.constant 0 : index
    %21 = vector.load %arg3[%c2, %c0_8, %c0_9] : memref<3x16x48xbf16, #tpu.memory_space<vmem>>, vector<1x16x48xbf16>
    %22 = vector.shape_cast %21 : vector<1x16x48xbf16> to vector<16x48xbf16>
    %cst_10 = arith.constant dense<0.000000e+00> : vector<16x384xf32>
    %23 = tpu.matmul %22, %20, %cst_10 {dimension_numbers = #tpu.dot_dimension_numbers<[1], [0], [0], [1], [0, 0, 1, 1], [], []>} : vector<16x48xbf16>, vector<48x384xbf16>, vector<16x384xf32> -> vector<16x384xf32>
    %24 = arith.addf %16, %23 : vector<16x384xf32>
    %25 = tpu.iota {dimensions = array<i32: 1>} : vector<1x384xi32>
    %26 = arith.sitofp %25 : vector<1x384xi32> to vector<1x384xf32>
    %cst_11 = arith.constant 5.000000e-01 : f32
    %27 = vector.broadcast %cst_11 : f32 to vector<1x384xf32>
    %28 = arith.addf %26, %27 : vector<1x384xf32>
    %cst_12 = arith.constant 5.000000e-02 : f32
    %29 = vector.broadcast %cst_12 : f32 to vector<1x384xf32>
    %30 = arith.mulf %28, %29 : vector<1x384xf32>
    %31 = math.floor %30 : vector<1x384xf32>
    %cst_13 = arith.constant 2.000000e+01 : f32
    %32 = vector.broadcast %cst_13 : f32 to vector<1x384xf32>
    %33 = arith.mulf %31, %32 : vector<1x384xf32>
    %34 = arith.subf %26, %33 : vector<1x384xf32>
    %cst_14 = arith.constant 1.600000e+01 : f32
    %35 = vector.broadcast %cst_14 : f32 to vector<1x384xf32>
    %36 = arith.cmpf olt, %34, %35 : vector<1x384xf32>
    %c320_i32 = arith.constant 320 : i32
    %37 = vector.broadcast %c320_i32 : i32 to vector<1x384xi32>
    %38 = arith.cmpi slt, %25, %37 : vector<1x384xi32>
    %39 = arith.andi %36, %38 : vector<1x384xi1>
    %cst_15 = arith.constant 0.000000e+00 : f32
    %40 = vector.shape_cast %39 : vector<1x384xi1> to vector<1x384xi1>
    %41 = vector.broadcast %40 : vector<1x384xi1> to vector<16x384xi1>
    %42 = vector.broadcast %cst_15 : f32 to vector<16x384xf32>
    %43 = arith.select %41, %24, %42 : vector<16x384xi1>, vector<16x384xf32>
    %cst_16 = arith.constant dense<0.000000e+00> : vector<16xf32>
    %44 = vector.multi_reduction <add>, %43, %cst_16 [1] : vector<16x384xf32> to vector<16xf32>
    %45 = vector.shape_cast %44 : vector<16xf32> to vector<16x1xf32>
    %cst_17 = arith.constant 3.906250e-03 : f32
    %46 = vector.broadcast %cst_17 : f32 to vector<16x1xf32>
    %47 = arith.mulf %45, %46 : vector<16x1xf32>
    %48 = vector.broadcast %47 : vector<16x1xf32> to vector<16x384xf32>
    %49 = arith.subf %24, %48 : vector<16x384xf32>
    %50 = arith.mulf %49, %49 : vector<16x384xf32>
    %cst_18 = arith.constant 0.000000e+00 : f32
    %51 = vector.shape_cast %39 : vector<1x384xi1> to vector<1x384xi1>
    %52 = vector.broadcast %51 : vector<1x384xi1> to vector<16x384xi1>
    %53 = vector.broadcast %cst_18 : f32 to vector<16x384xf32>
    %54 = arith.select %52, %50, %53 : vector<16x384xi1>, vector<16x384xf32>
    %cst_19 = arith.constant dense<0.000000e+00> : vector<16xf32>
    %55 = vector.multi_reduction <add>, %54, %cst_19 [1] : vector<16x384xf32> to vector<16xf32>
    %56 = vector.shape_cast %55 : vector<16xf32> to vector<16x1xf32>
    %cst_20 = arith.constant 3.906250e-03 : f32
    %57 = vector.broadcast %cst_20 : f32 to vector<16x1xf32>
    %58 = arith.mulf %56, %57 : vector<16x1xf32>
    %cst_21 = arith.constant 9.99999974E-6 : f32
    %59 = vector.broadcast %cst_21 : f32 to vector<16x1xf32>
    %60 = arith.addf %58, %59 : vector<16x1xf32>
    %61 = math.rsqrt %60 : vector<16x1xf32>
    %62 = vector.broadcast %61 : vector<16x1xf32> to vector<16x384xf32>
    %63 = arith.mulf %49, %62 : vector<16x384xf32>
    %cst_22 = arith.constant 0.000000e+00 : f32
    %64 = vector.broadcast %cst_22 : f32 to vector<16x384xf32>
    %65 = arith.maximumf %63, %64 : vector<16x384xf32>
    %66 = arith.truncf %65 : vector<16x384xf32> to vector<16x384xbf16>
    %c0_23 = arith.constant 0 : index
    %c0_24 = arith.constant 0 : index
    %c0_25 = arith.constant 0 : index
    %67 = vector.load %arg4[%c0_23, %c0_24, %c0_25] : memref<1x16x384xbf16, #tpu.memory_space<vmem>>, vector<1x16x384xbf16>
    %68 = vector.shape_cast %67 : vector<1x16x384xbf16> to vector<16x384xbf16>
    %69 = vector.shape_cast %66 : vector<16x384xbf16> to vector<1x16x384xbf16>
    tpu.vector_store %arg4[%c0_23, %c0_24, %c0_25], %69 {strides = array<i32>} : memref<1x16x384xbf16, #tpu.memory_space<vmem>>, vector<1x16x384xbf16>,
    return
  }
  func.func @transform_0(%arg0: i32, %arg1: i32) -> (i32, i32, i32) {
    %c0_i32 = arith.constant 0 : i32
    %c0_i32_0 = arith.constant 0 : i32
    %c0_i32_1 = arith.constant 0 : i32
    return %arg0, %c0_i32, %c0_i32_0 : i32, i32, i32
  }
  func.func @transform_1(%arg0: i32, %arg1: i32) -> (i32, i32, i32) {
    %c0_i32 = arith.constant 0 : i32
    %c0_i32_0 = arith.constant 0 : i32
    %c0_i32_1 = arith.constant 0 : i32
    return %c0_i32, %arg1, %c0_i32_0 : i32, i32, i32
  }
  func.func @transform_2(%arg0: i32, %arg1: i32) -> (i32, i32, i32) {
    %c0_i32 = arith.constant 0 : i32
    %c0_i32_0 = arith.constant 0 : i32
    return %arg0, %arg1, %c0_i32 : i32, i32, i32
  }
}

module attributes {stable_mosaic.version = 11 : i64} {
  func.func @_stage2_kernel(%arg0: i32, %arg1: i32, %arg2: memref<1x16x512xbf16, #tpu.memory_space<vmem>>, %arg3: memref<3x16x48xbf16, #tpu.memory_space<vmem>>, %arg4: memref<1x16x384xf32, #tpu.memory_space<vmem>>, %arg5: memref<1x16x384xf32, #tpu.memory_space<vmem>>) attributes {dimension_semantics = [#tpu.dimension_semantics<parallel>, #tpu.dimension_semantics<parallel>], iteration_bounds = array<i64: 2, 1>, scalar_prefetch = 0 : i64, scratch_operands = 0 : i64, tpu.core_type = #tpu.core_type<tc>, window_params = [{transform_indices = @transform_0, window_bounds = array<i64: 1, 16, 512>}, {transform_indices = @transform_1, window_bounds = array<i64: 3, 16, 48>}, {transform_indices = @transform_2, window_bounds = array<i64: 1, 16, 384>}, {transform_indices = @transform_3, window_bounds = array<i64: 1, 16, 384>}]} {
    %c0 = arith.constant 0 : index
    %c0_0 = arith.constant 0 : index
    %c0_1 = arith.constant 0 : index
    %0 = vector.load %arg2[%c0, %c0_0, %c0_1] : memref<1x16x512xbf16, #tpu.memory_space<vmem>>, vector<1x16x512xbf16>
    %1 = vector.shape_cast %0 : vector<1x16x512xbf16> to vector<16x512xbf16>
    %2 = vector.extract_strided_slice %1 {offsets = [0, 0], sizes = [16, 384], strides = [1, 1]} : vector<16x512xbf16> to vector<16x384xbf16>
    %3 = vector.extract_strided_slice %1 {offsets = [0, 1], sizes = [16, 384], strides = [1, 1]} : vector<16x512xbf16> to vector<16x384xbf16>
    %4 = vector.extract_strided_slice %1 {offsets = [0, 2], sizes = [16, 384], strides = [1, 1]} : vector<16x512xbf16> to vector<16x384xbf16>
    %5 = tpu.concatenate %2, %3, %4 in 0 : vector<16x384xbf16>, vector<16x384xbf16>, vector<16x384xbf16> -> vector<48x384xbf16>
    %c0_2 = arith.constant 0 : index
    %c0_3 = arith.constant 0 : index
    %c0_4 = arith.constant 0 : index
    %6 = vector.load %arg3[%c0_2, %c0_3, %c0_4] : memref<3x16x48xbf16, #tpu.memory_space<vmem>>, vector<1x16x48xbf16>
    %7 = vector.shape_cast %6 : vector<1x16x48xbf16> to vector<16x48xbf16>
    %cst = arith.constant dense<0.000000e+00> : vector<16x384xf32>
    %8 = tpu.matmul %7, %5, %cst {dimension_numbers = #tpu.dot_dimension_numbers<[1], [0], [0], [1], [0, 0, 1, 1], [], []>} : vector<16x48xbf16>, vector<48x384xbf16>, vector<16x384xf32> -> vector<16x384xf32>
    %9 = vector.extract_strided_slice %1 {offsets = [0, 18], sizes = [16, 384], strides = [1, 1]} : vector<16x512xbf16> to vector<16x384xbf16>
    %10 = vector.extract_strided_slice %1 {offsets = [0, 19], sizes = [16, 384], strides = [1, 1]} : vector<16x512xbf16> to vector<16x384xbf16>
    %11 = vector.extract_strided_slice %1 {offsets = [0, 20], sizes = [16, 384], strides = [1, 1]} : vector<16x512xbf16> to vector<16x384xbf16>
    %12 = tpu.concatenate %9, %10, %11 in 0 : vector<16x384xbf16>, vector<16x384xbf16>, vector<16x384xbf16> -> vector<48x384xbf16>
    %c1 = arith.constant 1 : index
    %c0_5 = arith.constant 0 : index
    %c0_6 = arith.constant 0 : index
    %13 = vector.load %arg3[%c1, %c0_5, %c0_6] : memref<3x16x48xbf16, #tpu.memory_space<vmem>>, vector<1x16x48xbf16>
    %14 = vector.shape_cast %13 : vector<1x16x48xbf16> to vector<16x48xbf16>
    %cst_7 = arith.constant dense<0.000000e+00> : vector<16x384xf32>
    %15 = tpu.matmul %14, %12, %cst_7 {dimension_numbers = #tpu.dot_dimension_numbers<[1], [0], [0], [1], [0, 0, 1, 1], [], []>} : vector<16x48xbf16>, vector<48x384xbf16>, vector<16x384xf32> -> vector<16x384xf32>
    %16 = arith.addf %8, %15 : vector<16x384xf32>
    %17 = vector.extract_strided_slice %1 {offsets = [0, 36], sizes = [16, 384], strides = [1, 1]} : vector<16x512xbf16> to vector<16x384xbf16>
    %18 = vector.extract_strided_slice %1 {offsets = [0, 37], sizes = [16, 384], strides = [1, 1]} : vector<16x512xbf16> to vector<16x384xbf16>
    %19 = vector.extract_strided_slice %1 {offsets = [0, 38], sizes = [16, 384], strides = [1, 1]} : vector<16x512xbf16> to vector<16x384xbf16>
    %20 = tpu.concatenate %17, %18, %19 in 0 : vector<16x384xbf16>, vector<16x384xbf16>, vector<16x384xbf16> -> vector<48x384xbf16>
    %c2 = arith.constant 2 : index
    %c0_8 = arith.constant 0 : index
    %c0_9 = arith.constant 0 : index
    %21 = vector.load %arg3[%c2, %c0_8, %c0_9] : memref<3x16x48xbf16, #tpu.memory_space<vmem>>, vector<1x16x48xbf16>
    %22 = vector.shape_cast %21 : vector<1x16x48xbf16> to vector<16x48xbf16>
    %cst_10 = arith.constant dense<0.000000e+00> : vector<16x384xf32>
    %23 = tpu.matmul %22, %20, %cst_10 {dimension_numbers = #tpu.dot_dimension_numbers<[1], [0], [0], [1], [0, 0, 1, 1], [], []>} : vector<16x48xbf16>, vector<48x384xbf16>, vector<16x384xf32> -> vector<16x384xf32>
    %24 = arith.addf %16, %23 : vector<16x384xf32>
    %25 = tpu.iota {dimensions = array<i32: 1>} : vector<1x384xi32>
    %26 = arith.sitofp %25 : vector<1x384xi32> to vector<1x384xf32>
    %cst_11 = arith.constant 5.000000e-01 : f32
    %27 = vector.broadcast %cst_11 : f32 to vector<1x384xf32>
    %28 = arith.addf %26, %27 : vector<1x384xf32>
    %cst_12 = arith.constant 0.055555556 : f32
    %29 = vector.broadcast %cst_12 : f32 to vector<1x384xf32>
    %30 = arith.mulf %28, %29 : vector<1x384xf32>
    %31 = math.floor %30 : vector<1x384xf32>
    %cst_13 = arith.constant 1.800000e+01 : f32
    %32 = vector.broadcast %cst_13 : f32 to vector<1x384xf32>
    %33 = arith.mulf %31, %32 : vector<1x384xf32>
    %34 = arith.subf %26, %33 : vector<1x384xf32>
    %cst_14 = arith.constant 1.600000e+01 : f32
    %35 = vector.broadcast %cst_14 : f32 to vector<1x384xf32>
    %36 = arith.cmpf olt, %34, %35 : vector<1x384xf32>
    %c288_i32 = arith.constant 288 : i32
    %37 = vector.broadcast %c288_i32 : i32 to vector<1x384xi32>
    %38 = arith.cmpi slt, %25, %37 : vector<1x384xi32>
    %39 = arith.andi %36, %38 : vector<1x384xi1>
    %cst_15 = arith.constant 0.000000e+00 : f32
    %40 = vector.shape_cast %39 : vector<1x384xi1> to vector<1x384xi1>
    %41 = vector.broadcast %40 : vector<1x384xi1> to vector<16x384xi1>
    %42 = vector.broadcast %cst_15 : f32 to vector<16x384xf32>
    %43 = arith.select %41, %24, %42 : vector<16x384xi1>, vector<16x384xf32>
    %cst_16 = arith.constant dense<0.000000e+00> : vector<16xf32>
    %44 = vector.multi_reduction <add>, %43, %cst_16 [1] : vector<16x384xf32> to vector<16xf32>
    %45 = vector.shape_cast %44 : vector<16xf32> to vector<16x1xf32>
    %cst_17 = arith.constant 3.906250e-03 : f32
    %46 = vector.broadcast %cst_17 : f32 to vector<16x1xf32>
    %47 = arith.mulf %45, %46 : vector<16x1xf32>
    %48 = vector.broadcast %47 : vector<16x1xf32> to vector<16x384xf32>
    %49 = arith.subf %24, %48 : vector<16x384xf32>
    %50 = arith.mulf %49, %49 : vector<16x384xf32>
    %cst_18 = arith.constant 0.000000e+00 : f32
    %51 = vector.shape_cast %39 : vector<1x384xi1> to vector<1x384xi1>
    %52 = vector.broadcast %51 : vector<1x384xi1> to vector<16x384xi1>
    %53 = vector.broadcast %cst_18 : f32 to vector<16x384xf32>
    %54 = arith.select %52, %50, %53 : vector<16x384xi1>, vector<16x384xf32>
    %cst_19 = arith.constant dense<0.000000e+00> : vector<16xf32>
    %55 = vector.multi_reduction <add>, %54, %cst_19 [1] : vector<16x384xf32> to vector<16xf32>
    %56 = vector.shape_cast %55 : vector<16xf32> to vector<16x1xf32>
    %cst_20 = arith.constant 3.906250e-03 : f32
    %57 = vector.broadcast %cst_20 : f32 to vector<16x1xf32>
    %58 = arith.mulf %56, %57 : vector<16x1xf32>
    %cst_21 = arith.constant 9.99999974E-6 : f32
    %59 = vector.broadcast %cst_21 : f32 to vector<16x1xf32>
    %60 = arith.addf %58, %59 : vector<16x1xf32>
    %61 = math.rsqrt %60 : vector<16x1xf32>
    %62 = vector.broadcast %61 : vector<16x1xf32> to vector<16x384xf32>
    %63 = arith.mulf %49, %62 : vector<16x384xf32>
    %c0_22 = arith.constant 0 : index
    %c0_23 = arith.constant 0 : index
    %c0_24 = arith.constant 0 : index
    %64 = vector.load %arg4[%c0_22, %c0_23, %c0_24] : memref<1x16x384xf32, #tpu.memory_space<vmem>>, vector<1x16x384xf32>
    %65 = vector.shape_cast %64 : vector<1x16x384xf32> to vector<16x384xf32>
    %66 = arith.addf %65, %63 : vector<16x384xf32>
    %c0_25 = arith.constant 0 : index
    %c0_26 = arith.constant 0 : index
    %c0_27 = arith.constant 0 : index
    %67 = vector.load %arg5[%c0_25, %c0_26, %c0_27] : memref<1x16x384xf32, #tpu.memory_space<vmem>>, vector<1x16x384xf32>
    %68 = vector.shape_cast %67 : vector<1x16x384xf32> to vector<16x384xf32>
    %69 = vector.shape_cast %66 : vector<16x384xf32> to vector<1x16x384xf32>
    tpu.vector_store %arg5[%c0_25, %c0_26, %c0_27], %69 {strides = array<i32>} : memref<1x16x384xf32, #tpu.memory_space<vmem>>, vector<1x16x384xf32>,
    return
  }
  func.func @transform_0(%arg0: i32, %arg1: i32) -> (i32, i32, i32) {
    %c0_i32 = arith.constant 0 : i32
    %c0_i32_0 = arith.constant 0 : i32
    %c0_i32_1 = arith.constant 0 : i32
    return %arg0, %c0_i32, %c0_i32_0 : i32, i32, i32
  }
  func.func @transform_1(%arg0: i32, %arg1: i32) -> (i32, i32, i32) {
    %c0_i32 = arith.constant 0 : i32
    %c0_i32_0 = arith.constant 0 : i32
    %c0_i32_1 = arith.constant 0 : i32
    return %c0_i32, %arg1, %c0_i32_0 : i32, i32, i32
  }
  func.func @transform_2(%arg0: i32, %arg1: i32) -> (i32, i32, i32) {
    %c0_i32 = arith.constant 0 : i32
    %c0_i32_0 = arith.constant 0 : i32
    return %arg0, %arg1, %c0_i32 : i32, i32, i32
  }
  func.func @transform_3(%arg0: i32, %arg1: i32) -> (i32, i32, i32) {
    %c0_i32 = arith.constant 0 : i32
    %c0_i32_0 = arith.constant 0 : i32
    return %arg0, %arg1, %c0_i32 : i32, i32, i32
  }
}

</mosaic_0001>

<bundles_post_ra>
// kernel: resnet_block_forward.2
= control target key start
LH: loop header
LB: loop body
LE: loop exit
PB: predicated region body
PF: predicated region fallthrough
CT: control target
= control target key end

     0   :  { %s1031_s9 = smov 0   ;;  %s1033_s10 = smov 0   ;;  %s1208_s0 = inlined_call_operand.vmem [shape: bf16[2,16,512], index: 0, kind: input, shape index: {}]   ;;  %s1209_s1 = inlined_call_operand.vmem [shape: bf16[3,16,48], index: 1, kind: input, shape index: {}]   ;;  %s1210_s2 = inlined_call_operand.vmem [shape: bf16[2,16,384], index: 2, kind: output, shape index: {}]  }
   0x1   :  { %s1035_s11 = smov 0  }
   0x2 LB: > { %s24_s12 = sadd.s32 1, %s1003_s10  ;;  %p850_p0 = scmp.ge.s32.totalorder %s1007_s11, 1  ;;  %s1007_s11 = sphi %s1035_s11, %s12_s11   ;;  %s1003_s10 = sphi %s1033_s10, %s1214_s10   ;;  %s999_s9 = sphi %s1031_s9, %s1213_s9  }
   0x3   : > { %p26_p1 = scmp.ge.s32.totalorder %s24_s12, 2  ;;  %p137_p2 = scmp.lt.s32.totalorder %s1007_s11, 3 }
   0x5   : > { %s1216_s12 = smov (%p26_p1, %s24_s12), 0  ;;  %p138_p3 = pnand %p850_p0, %p137_p2 }
   0x6   : > { %p169_p4 = scmp.lt.s32.totalorder (!%p138_p3), %s999_s9, 1  ;;  %s1009_s17 = smov (!%p138_p3), 126   ;;  %v1012_v4 = vmov (!%p138_p3), 0.0   ;;  %vm223_vm0 = vcmask (!%p138_p3), 1031168   ;;  %v1013_v12 = vmov (!%p138_p3), 0   ;;  %vm1014_vm1 = vmmov (!%p138_p3), 0  }
   0x7   : > { %141 = sbr.rel (%p138_p3) target bundleno = 835 (0x343), region = 28  ;;  %s1010_s18 = smov (!%p138_p3), 124   ;;  %894 = vmatprep.subr.bf16.mxu1 (!%p138_p3), %v1012_v4  ;;  %334 = vmatprep.mubr.bf16.mxu0 (!%p138_p3), %v1013_v12  ;;  %vm238_vm2 = vcmask (!%p138_p3), 1014784   ;;  %vm279_vm3 = vcmask (!%p138_p3), 719872   ;;  %v978_v41 = vld [vmem:[%s1209_s1 + $0x8] sm:$0xff] (!%p138_p3)   ;;  %vm298_vm4 = vcmask (!%p138_p3), 392192  }
   0x8   : > { %s1011_s19 = smov (!%p138_p3), 88   ;;  %900 = vmatprep.mubr.msk.bf16.mxu1 (!%p138_p3), %vm1014_vm1, %v1012_v4  ;;  %s1015_s20 = smov (!%p138_p3), 48   ;;  %v979_v48 = vld [vmem:[%s1209_s1] sm:$0xff] (!%p138_p3)  }
   0xe   : > { %s1218_s9 = smov (!%p169_p4, %s999_s9), 1 }
   0xf   : > { %s877_s13 = sshll.u32 %s1218_s9, 5  ;;  %s940_s27 = smul.u32 24, %s1218_s9 }
  0x10   : > { %s173_s16 = scalar_lea.vmem %s1208_s0, %s877_s13 }
  0x11   : > { %v1055_v0 = vld [vmem:[%s173_s16 + $0xc] ss:$16 sps:$4 sm:$0xff]   ;;  %v1058_v1 = vld [vmem:[%s173_s16 + $0x4] ss:$16 sps:$4 sm:$0xff]   ;;  %v1060_v2 = vld [vmem:[%s173_s16] ss:$16 sps:$4 sm:$0xff]   ;;  %s189_s30 = scalar_lea.vmem %s1210_s2, %s940_s27 }
  0x12   : > { %221 = vrot.lane.b32.xlu1 %v1055_v0, %s1009_s17  ;;  %v1062_v3 = vld [vmem:[%s173_s16 + $0x8] ss:$16 sps:$4 sm:$0xff]   ;;  %217 = vrot.lane.b32.xlu0 %v1058_v1, %s1009_s17 }
  0x16   : > { %215 = vrot.lane.b32.xlu1 %v1060_v2, %s1009_s17  ;;  %219 = vrot.lane.b32.xlu0 %v1062_v3, %s1009_s17 }
  0x1a   : > { %234 = vrot.lane.b32.xlu1 %v1062_v3, %s1010_s18  ;;  %232 = vrot.lane.b32.xlu0 %v1058_v1, %s1010_s18 }
  0x1e   : > { %230 = vrot.lane.b32.xlu1 %v1060_v2, %s1010_s18  ;;  %236 = vrot.lane.b32.xlu0 %v1055_v0, %s1010_s18 }
  0x22   : > { %259 = vrot.lane.b32.xlu1 %v1062_v3, %s1011_s19  ;;  %257 = vrot.lane.b32.xlu0 %v1058_v1, %s1011_s19 }
  0x26   : > { %261 = vrot.lane.b32.xlu1 %v1055_v0, %s1011_s19  ;;  %255 = vrot.lane.b32.xlu0 %v1060_v2, %s1011_s19 }
  0x84   : > { %v222_v5 = vpop.permute.xlu1 %221  ;;  %v218_v6 = vpop.permute.xlu0 %217 }
  0x85   : > { %269 = vrot.lane.b32.xlu1 %v222_v5, %s1011_s19 }
  0x88   : > { %v216_v7 = vpop.permute.xlu1 %215  ;;  %v220_v8 = vpop.permute.xlu0 %219 }
  0x89   : > { %v1081_v9 = vsel %vm223_vm0, %v218_v6, %v220_v8  ;;  %v1083_v10 = vsel %vm223_vm0, %v220_v8, %v222_v5  ;;  %v1092_v14 = vsel %vm223_vm0, %v216_v7, %v218_v6 }
  0x8a   : > { %265 = vrot.lane.b32.xlu0 %v1081_v9, %s1011_s19  ;;  %267 = vrot.lane.b32.xlu1 %v1083_v10, %s1011_s19 }
  0x8c   : > { %v235_v11 = vpop.permute.xlu1 %234  ;;  %v233_v13 = vpop.permute.xlu0 %232 }
  0x8d   : > { %v1096_v16 = vsel %vm238_vm2, %v233_v13, %v235_v11 }
  0x8e   : > { %263 = vrot.lane.b32.xlu0 %v1092_v14, %s1011_s19 }
  0x90   : > { %v231_v15 = vpop.permute.xlu1 %230  ;;  %v237_v17 = vpop.permute.xlu0 %236 }
  0x91   : > { %v1098_v18 = vsel %vm238_vm2, %v235_v11, %v237_v17  ;;  %v1104_v21 = vsel %vm238_vm2, %v231_v15, %v233_v13 }
  0x92   : > { %275 = vrot.lane.b32.xlu1 %v1098_v18, %s1011_s19  ;;  %273 = vrot.lane.b32.xlu0 %v1096_v16, %s1011_s19 }
  0x94   : > { %v260_v19 = vpop.permute.xlu1 %259  ;;  %v258_v20 = vpop.permute.xlu0 %257 }
  0x95   : > { %v281_v22 = vsel %vm279_vm3, %v258_v20, %v260_v19 }
  0x96   : > { %277 = vrot.lane.b32.xlu1 %v237_v17, %s1011_s19  ;;  %271 = vrot.lane.b32.xlu0 %v1104_v21, %s1011_s19 }
  0x97   : > { %302 = vmatprep.subr.bf16.mxu0 %v281_v22 }
  0x98   : > { %v262_v23 = vpop.permute.xlu1 %261  ;;  %v256_v25 = vpop.permute.xlu0 %255 }
  0x99   : > { %v282_v24 = vsel %vm279_vm3, %v260_v19, %v262_v23  ;;  %v280_v26 = vsel %vm279_vm3, %v256_v25, %v258_v20 }
  0x9a   : > { %895 = vmatpush3.bf16.msra.mxu1 %v282_v24  ;;  %490 = vrot.lane.b32.xlu1 %v1062_v3, %s1015_s20 }
  0x9b   : > { %896 = vmatprep.subr.bf16.mxu1 %v1012_v4  ;;  %488 = vrot.lane.b32.xlu0 %v1058_v1, %s1015_s20 }
  0x9c   : > { %303 = vmatpush1.bf16.msra.mxu0 %v280_v26 }
  0x9e   : > { %492 = vrot.lane.b32.xlu1 %v1055_v0, %s1015_s20  ;;  %v980_v0 = vld [vmem:[%s1209_s1 + $0x10] sm:$0xff]  }
  0x9f   : > { %486 = vrot.lane.b32.xlu0 %v1060_v2, %s1015_s20 }
  0xa2   : > { %500 = vrot.lane.b32.xlu1 %v222_v5, %s1015_s20 }
  0xa3   : > { %496 = vrot.lane.b32.xlu0 %v1081_v9, %s1015_s20 }
  0xa6   : > { %498 = vrot.lane.b32.xlu1 %v1083_v10, %s1015_s20 }
  0xa7   : > { %494 = vrot.lane.b32.xlu0 %v1092_v14, %s1015_s20 }
  0xaa   : > { %506 = vrot.lane.b32.xlu1 %v1098_v18, %s1015_s20 }
  0xab   : > { %504 = vrot.lane.b32.xlu0 %v1096_v16, %s1015_s20 }
  0xae   : > { %508 = vrot.lane.b32.xlu1 %v237_v17, %s1015_s20 }
  0xaf   : > { %502 = vrot.lane.b32.xlu0 %v1104_v21, %s1015_s20 }
  0xf7   : > { %v270_v27 = vpop.permute.xlu1 %269 }
  0xfc   : > { %v266_v28 = vpop.permute.xlu0 %265  ;;  %v268_v29 = vpop.permute.xlu1 %267 }
  0xfd   : > { %v284_v30 = vsel %vm279_vm3, %v266_v28, %v268_v29  ;;  %v285_v31 = vsel %vm279_vm3, %v268_v29, %v270_v27 }
  0xfe   : > { %304 = vmatprep.subr.bf16.mxu0 %v284_v30  ;;  %897 = vmatpush3.bf16.msra.mxu1 %v285_v31 }
  0xff   : > { %898 = vmatprep.subr.bf16.mxu1 %v1012_v4 }
 0x100   : > { %v264_v32 = vpop.permute.xlu0 %263 }
 0x101   : > { %v283_v33 = vsel %vm279_vm3, %v264_v32, %v266_v28 }
 0x102   : > { %305 = vmatpush1.bf16.msra.mxu0 %v283_v33 }
 0x104   : > { %v274_v34 = vpop.permute.xlu0 %273  ;;  %v276_v35 = vpop.permute.xlu1 %275 }
 0x105   : > { %v287_v36 = vsel %vm279_vm3, %v274_v34, %v276_v35 }
 0x106   : > { %306 = vmatprep.subr.bf16.mxu0 %v287_v36 }
 0x108   : > { %v272_v37 = vpop.permute.xlu0 %271  ;;  %v278_v38 = vpop.permute.xlu1 %277 }
 0x109   : > { %v286_v39 = vsel %vm279_vm3, %v272_v37, %v274_v34  ;;  %v288_v40 = vsel %vm279_vm3, %v276_v35, %v278_v38 }
 0x10a   : > { %307 = vmatpush1.bf16.msra.mxu0 %v286_v39  ;;  %899 = vmatpush3.bf16.msra.mxu1 %v288_v40 }
 0x10b   : > { %394 = vmatprep.subr.bf16.mxu0 %v1058_v1  ;;  %904 = vmatprep.subr.bf16.mxu1 %v1012_v4  ;;  %v622_v1 = vlaneseq }
 0x10c   : > { %v491_v43 = vpop.permute.xlu1 %490 }
 0x10d   : > { %v489_v42 = vpop.permute.xlu0 %488  ;;  %861 = vmatmul.mubr.msk.bf16.vlgmr.msra.gmra.mrb[0].mxu0 %vm298_vm4, %v978_v41  ;;  %901 = vmatmul.mubr.msk.bf16.vlgmr.msra.gmra.mrb[0].mxu1 %vm298_vm4, %v978_v41 }
 0x10e   : > { %395 = vmatpush1.bf16.msra.mxu0 %v1060_v2  ;;  %905 = vmatpush3.bf16.msra.mxu1 %v1062_v3  ;;  %v512_v49 = vsel %vm298_vm4, %v489_v42, %v491_v43  ;;  %v623_v2 = vand.u32 127, %v622_v1 }
 0x10f   : > { %396 = vmatprep.subr.bf16.mxu0 %v1081_v9  ;;  %906 = vmatprep.subr.bf16.mxu1 %v1012_v4 }
 0x110   : > { %v493_v45 = vpop.permute.xlu1 %492  ;;  %426 = vmatprep.mubr.bf16.mxu0 %v1013_v12  ;;  %910 = vmatprep.mubr.msk.bf16.mxu1 %vm1014_vm1, %v1012_v4  ;;  %v625_v3 = vadd.s32 256, %v623_v2  ;;  %v626_v5 = vcvt.s32.f32 %v623_v2 }
 0x111   : > { %v487_v44 = vpop.permute.xlu0 %486  ;;  %v513_v53 = vsel %vm298_vm4, %v491_v43, %v493_v45 }
 0x112   : > { %397 = vmatpush1.bf16.msra.mxu0 %v1092_v14  ;;  %907 = vmatpush3.bf16.msra.mxu1 %v1083_v10  ;;  %v511_v52 = vsel %vm298_vm4, %v487_v44, %v489_v42  ;;  %v628_v6 = vcvt.s32.f32 %v625_v3  ;;  %v629_v8 = vadd.f32 0.5, %v626_v5  ;;  %vm649_vm7 = vcmp.lt.s32.totalorder %v625_v3, 320 }
 0x113   : > { %398 = vmatprep.subr.bf16.mxu0 %v1096_v16  ;;  %908 = vmatprep.subr.bf16.mxu1 %v1012_v4 }
 0x114   : > { %v501_v47 = vpop.permute.xlu1 %500  ;;  %v631_v9 = vadd.f32 0.5, %v628_v6  ;;  %v632_v11 = vmul.f32 0.05, %v629_v8 }
 0x115   : > { %v497_v46 = vpop.permute.xlu0 %496 }
 0x116   : > { %399 = vmatpush1.bf16.msra.mxu0 %v1104_v21  ;;  %909 = vmatpush3.bf16.msra.mxu1 %v1098_v18  ;;  %v635_v14 = vfloor.f32 %v632_v11 }
 0x117   : > { %532 = vmatprep.subr.bf16.mxu0 %v512_v49  ;;  %914 = vmatprep.subr.bf16.mxu1 %v1012_v4 }
 0x118   : > { %v499_v51 = vpop.permute.xlu1 %498  ;;  %v638_v17 = vmul.f32 20.0, %v635_v14 }
 0x119   : > { %v495_v50 = vpop.permute.xlu0 %494  ;;  %864 = vmatmul.mubr.msk.bf16.vlgmr.msra.gmra.mrb[0].mxu0 %vm298_vm4, %v979_v48  ;;  %911 = vmatmul.mubr.msk.bf16.vlgmr.msra.gmra.mrb[0].mxu1 %vm298_vm4, %v979_v48  ;;  %v515_v54 = vsel %vm298_vm4, %v497_v46, %v499_v51  ;;  %v516_v58 = vsel %vm298_vm4, %v499_v51, %v501_v47 }
 0x11a   : > { %533 = vmatpush1.bf16.msra.mxu0 %v511_v52  ;;  %915 = vmatpush3.bf16.msra.mxu1 %v513_v53  ;;  %v514_v57 = vsel %vm298_vm4, %v495_v50, %v497_v46  ;;  %v641_v20 = vsub.f32 %v626_v5, %v638_v17 }
 0x11b   : > { %534 = vmatprep.subr.bf16.mxu0 %v515_v54  ;;  %916 = vmatprep.subr.bf16.mxu1 %v1012_v4 }
 0x11c   : > { %v507_v56 = vpop.permute.xlu1 %506  ;;  %564 = vmatprep.mubr.bf16.mxu0 %v1013_v12  ;;  %920 = vmatprep.mubr.msk.bf16.mxu1 %vm1014_vm1, %v1012_v4  ;;  %v634_v12 = vmul.f32 0.05, %v631_v9  ;;  %vm644_vm5 = vcmp.lt.f32.partialorder %v641_v20, 16.0 }
 0x11d   : > { %v505_v55 = vpop.permute.xlu0 %504 }
 0x11e   : > { %v518_v59 = vsel %vm298_vm4, %v505_v55, %v507_v56  ;;  %535 = vmatpush1.bf16.msra.mxu0 %v514_v57  ;;  %917 = vmatpush3.bf16.msra.mxu1 %v516_v58  ;;  %v637_v15 = vfloor.f32 %v634_v12 }
 0x11f   : > { %536 = vmatprep.subr.bf16.mxu0 %v518_v59  ;;  %918 = vmatprep.subr.bf16.mxu1 %v1012_v4  ;;  %v624_v4 = vadd.s32 128, %v623_v2 }
 0x120   : > { %v509_v61 = vpop.permute.xlu1 %508  ;;  %v640_v18 = vmul.f32 20.0, %v637_v15 }
 0x121   : > { %v503_v60 = vpop.permute.xlu0 %502  ;;  %v519_v63 = vsel %vm298_vm4, %v507_v56, %v509_v61  ;;  %v627_v7 = vcvt.s32.f32 %v624_v4 }
 0x122   : > { %v517_v62 = vsel %vm298_vm4, %v503_v60, %v505_v55  ;;  %919 = vmatpush3.bf16.msra.mxu1 %v519_v63  ;;  %v643_v21 = vsub.f32 %v628_v6, %v640_v18 }
 0x123   : > { %537 = vmatpush1.bf16.msra.mxu0 %v517_v62  ;;  %v630_v10 = vadd.f32 0.5, %v627_v7 }
 0x124   : > { %vm646_vm6 = vcmp.lt.f32.partialorder %v643_v21, 16.0 }
 0x125   : > { %921 = vmatmul.mubr.msk.bf16.vlgmr.msra.gmra.mrb[0].mxu1 %vm298_vm4, %v980_v0  ;;  %v633_v13 = vmul.f32 0.05, %v630_v10  ;;  %vm1176_vm9 = vmand %vm646_vm6, %vm649_vm7 }
 0x126   : > { %869 = vmatmul.mubr.msk.bf16.vlgmr.msra.gmra.mrb[0].mxu0 %vm298_vm4, %v980_v0 }
 0x127   : > { %v636_v16 = vfloor.f32 %v633_v13 }
 0x129   : > { %v639_v19 = vmul.f32 20.0, %v636_v16 }
 0x12b   : > { %v642_v22 = vsub.f32 %v627_v7, %v639_v19 }
 0x12d   : > { %vm645_vm8 = vcmp.lt.f32.partialorder %v642_v22, 16.0 }
 0x1f8   : > { %v609_v24 = vpop.f32.mrb[0].mxu1 }
 0x1f9   : > { %v566_v23 = vpop.f32.mrb[0].mxu0  ;;  %v922_v28 = vpop.f32.mrb[1].mxu1  ;;  %v661_v36 = vsel %vm1176_vm9, %v609_v24, 0.0 }
 0x1fa   : > { %v659_v25 = vsel %vm644_vm5, %v566_v23, 0.0  ;;  %v568_v27 = vpop.f32.mrb[1].mxu0  ;;  %v612_v31 = vpop.f32.mrb[2].mxu1 }
 0x1fb   : > { %v660_v29 = vsel %vm645_vm8, %v568_v27, 0.0  ;;  %v570_v30 = vpop.f32.mrb[2].mxu0  ;;  %v923_v35 = vpop.f32.mrb[3].mxu1  ;;  %v664_v40 = vsel %vm1176_vm9, %v612_v31, 0.0 }
 0x1fc   : > { %v665_v32 = vadd.f32 %v660_v29, %v659_v25  ;;  %v662_v33 = vsel %vm644_vm5, %v570_v30, 0.0  ;;  %v572_v34 = vpop.f32.mrb[3].mxu0 }
 0x1fd   : > { %v663_v37 = vsel %vm645_vm8, %v572_v34, 0.0 }
 0x1fe   : > { %v669_v38 = vadd.f32 %v663_v37, %v662_v33  ;;  %v666_v39 = vadd.f32 %v665_v32, %v661_v36 }
 0x200   : > { %667 = vadd.xlane.f32.xlu0 %v666_v39  ;;  %v670_v41 = vadd.f32 %v669_v38, %v664_v40 }
 0x202   : > { %671 = vadd.xlane.f32.xlu1 %v670_v41 }
 0x28d   : > { %v668_v42 = vpop.xlane.xlu0 %667 }
 0x28e   : > { %v673_v43 = vmul.f32 0.00390625, %v668_v42 }
 0x28f   : > { %v672_v44 = vpop.xlane.xlu1 %671 }
 0x290   : > { %v675_v45 = vsub.f32 %v566_v23, %v673_v43  ;;  %v676_v46 = vsub.f32 %v568_v27, %v673_v43  ;;  %v677_v47 = vsub.f32 %v609_v24, %v673_v43  ;;  %v674_v48 = vmul.f32 0.00390625, %v672_v44 }
 0x292   : > { %v678_v49 = vsub.f32 %v570_v30, %v674_v48  ;;  %v679_v50 = vsub.f32 %v572_v34, %v674_v48  ;;  %v681_v51 = vmul.f32 %v675_v45, %v675_v45  ;;  %v680_v52 = vsub.f32 %v612_v31, %v674_v48 }
 0x293   : > { %v682_v53 = vmul.f32 %v676_v46, %v676_v46  ;;  %v683_v54 = vmul.f32 %v677_v47, %v677_v47 }
 0x294   : > { %v684_v55 = vmul.f32 %v678_v49, %v678_v49  ;;  %v685_v56 = vmul.f32 %v679_v50, %v679_v50  ;;  %v687_v57 = vsel %vm644_vm5, %v681_v51, 0.0  ;;  %v686_v63 = vmul.f32 %v680_v52, %v680_v52 }
 0x295   : > { %v688_v58 = vsel %vm645_vm8, %v682_v53, 0.0  ;;  %v689_v62 = vsel %vm1176_vm9, %v683_v54, 0.0 }
 0x296   : > { %v693_v59 = vadd.f32 %v688_v58, %v687_v57  ;;  %v690_v60 = vsel %vm644_vm5, %v684_v55, 0.0  ;;  %v691_v61 = vsel %vm645_vm8, %v685_v56, 0.0  ;;  %v692_v2 = vsel %vm1176_vm9, %v686_v63, 0.0 }
 0x297   : > { %v697_v1 = vadd.f32 %v691_v61, %v690_v60 }
 0x298   : > { %v694_v0 = vadd.f32 %v693_v59, %v689_v62 }
 0x299   : > { %v698_v3 = vadd.f32 %v697_v1, %v692_v2 }
 0x29a   : > { %695 = vadd.xlane.f32.xlu0 %v694_v0 }
 0x29e   : > { %699 = vadd.xlane.f32.xlu0 %v698_v3 }
 0x327   : > { %v696_v4 = vpop.xlane.xlu0 %695 }
 0x328   : > { %v701_v5 = vmul.f32 0.00390625, %v696_v4 }
 0x32a   : > { %v703_v6 = vadd.f32 1e-05, %v701_v5 }
 0x32b   : > { %v700_v7 = vpop.xlane.xlu0 %699 }
 0x32c   : > { %981 = vrsqrt.f32 %v703_v6  ;;  %v702_v8 = vmul.f32 0.00390625, %v700_v7 }
 0x32e   : > { %v704_v9 = vadd.f32 1e-05, %v702_v8 }
 0x330   : > { %983 = vrsqrt.f32 %v704_v9 }
 0x336   : > { %v982_v10 = vpop.eup %981 }
 0x337   : > { %v707_v11 = vmul.f32 %v982_v10, %v675_v45  ;;  %v708_v12 = vmul.f32 %v982_v10, %v676_v46  ;;  %v709_v13 = vmul.f32 %v982_v10, %v677_v47 }
 0x339   : > { %v713_v14 = vmax.f32 %v707_v11, 0.0  ;;  %v714_v15 = vmax.f32 %v708_v12, 0.0  ;;  %v715_v16 = vmax.f32 %v709_v13, 0.0 }
 0x33a   : > { %v984_v17 = vpop.eup %983 }
 0x33b   : > { %v878_v18 = vpack.c.bf16 %v714_v15, %v713_v14  ;;  %v879_v19 = vpack.c.bf16 %v715_v16, %v715_v16  ;;  %v710_v20 = vmul.f32 %v984_v17, %v678_v49  ;;  %v711_v21 = vmul.f32 %v984_v17, %v679_v50 }
 0x33c   : > { %v712_v22 = vmul.f32 %v984_v17, %v680_v52 }
 0x33d   : > { %739 = vst [vmem:[%s189_s30] sm:$0xff] %v878_v18  ;;  %740 = vst [vmem:[%s189_s30 + $0x8] sm:$0xf] %v879_v19  ;;  %v716_v23 = vmax.f32 %v710_v20, 0.0  ;;  %v717_v24 = vmax.f32 %v711_v21, 0.0 }
 0x33e   : > { %v718_v25 = vmax.f32 %v712_v22, 0.0 }
 0x33f   : > { %v880_v26 = vpack.c.bf16 %v717_v24, %v716_v23 }
 0x340   : > { %v881_v27 = vpack.c.bf16 %v718_v25, %v718_v25 }
 0x341   : > { %741 = vst [vmem:[%s189_s30 + $0xc] sm:$0xff] %v880_v26 }
 0x342   : > { %742 = vst [vmem:[%s189_s30 + $0x14] sm:$0xf] %v881_v27 }
 0x343 PF: > { %s12_s11 = sadd.s32 1, %s1007_s11   ;;  %s1213_s9 = smov %s1003_s10 }
 0x344   : > { %p9_p5 = scmp.ge.s32.totalorder %s12_s11, 4   ;;  %s1214_s10 = smov %s1216_s12 }
 0x346   :  { %11 = sbr.rel (!%p9_p5) target bundleno = 2 (0x2), region = 63 }

// kernel: resnet_block_forward.3
= control target key start
LH: loop header
LB: loop body
LE: loop exit
PB: predicated region body
PF: predicated region fallthrough
CT: control target
= control target key end

     0   :  { %s1104_s12 = smov 0   ;;  %s1106_s13 = smov 0   ;;  %s1284_s0 = inlined_call_operand.vmem [shape: bf16[2,16,512], index: 0, kind: input, shape index: {}]   ;;  %s1285_s1 = inlined_call_operand.vmem [shape: bf16[3,16,48], index: 1, kind: input, shape index: {}]   ;;  %s1286_s2 = inlined_call_operand.vmem [shape: f32[2,16,384], index: 2, kind: input, shape index: {}]   ;;  %s1287_s3 = inlined_call_operand.vmem [shape: f32[2,16,384], index: 3, kind: output, shape index: {}]  }
   0x1   :  { %s1108_s14 = smov 0  }
   0x2 LB: > { %s25_s15 = sadd.s32 1, %s1071_s13  ;;  %p925_p0 = scmp.ge.s32.totalorder %s1075_s14, 1  ;;  %s1075_s14 = sphi %s1108_s14, %s13_s14   ;;  %s1071_s13 = sphi %s1106_s13, %s1291_s13   ;;  %s1067_s12 = sphi %s1104_s12, %s1290_s12  }
   0x3   : > { %p27_p1 = scmp.ge.s32.totalorder %s25_s15, 2  ;;  %p180_p2 = scmp.lt.s32.totalorder %s1075_s14, 3 }
   0x5   : > { %s1293_s15 = smov (%p27_p1, %s25_s15), 0  ;;  %p181_p3 = pnand %p925_p0, %p180_p2 }
   0x6   : > { %p224_p4 = scmp.lt.s32.totalorder (!%p181_p3), %s1067_s12, 1  ;;  %s1077_s20 = smov (!%p181_p3), 127   ;;  %v1080_v4 = vmov (!%p181_p3), 0.0   ;;  %vm289_vm0 = vcmask (!%p181_p3), 1039360   ;;  %v1081_v12 = vmov (!%p181_p3), 0   ;;  %vm1082_vm1 = vmmov (!%p181_p3), 0  }
   0x7   : > { %184 = sbr.rel (%p181_p3) target bundleno = 833 (0x341), region = 32  ;;  %s1078_s21 = smov (!%p181_p3), 126   ;;  %962 = vmatprep.subr.bf16.mxu1 (!%p181_p3), %v1080_v4  ;;  %400 = vmatprep.mubr.bf16.mxu0 (!%p181_p3), %v1081_v12  ;;  %vm304_vm2 = vcmask (!%p181_p3), 1031168   ;;  %vm345_vm3 = vcmask (!%p181_p3), 900096   ;;  %v1046_v41 = vld [vmem:[%s1285_s1 + $0x8] sm:$0xff] (!%p181_p3)   ;;  %vm364_vm4 = vcmask (!%p181_p3), 392192  }
   0x8   : > { %s1079_s22 = smov (!%p181_p3), 110   ;;  %968 = vmatprep.mubr.msk.bf16.mxu1 (!%p181_p3), %vm1082_vm1, %v1080_v4  ;;  %s1083_s23 = smov (!%p181_p3), 92   ;;  %vm576_vm5 = vcmask (!%p181_p3), 752640   ;;  %v1047_v48 = vld [vmem:[%s1285_s1] sm:$0xff] (!%p181_p3)  }
   0xe   : > { %s1295_s12 = smov (!%p224_p4, %s1067_s12), 1 }
   0xf   : > { %s949_s16 = sshll.u32 %s1295_s12, 5  ;;  %s1008_s30 = smul.u32 48, %s1295_s12 }
  0x10   : > { %s228_s19 = scalar_lea.vmem %s1284_s0, %s949_s16 }
  0x11   : > { %v1128_v0 = vld [vmem:[%s228_s19 + $0xc] ss:$16 sps:$4 sm:$0xff]   ;;  %v1131_v1 = vld [vmem:[%s228_s19 + $0x4] ss:$16 sps:$4 sm:$0xff]   ;;  %v1133_v2 = vld [vmem:[%s228_s19] ss:$16 sps:$4 sm:$0xff]   ;;  %s244_s6 = scalar_lea.vmem %s1286_s2, %s1008_s30  ;;  %s255_s9 = scalar_lea.vmem %s1287_s3, %s1008_s30 }
  0x12   : > { %287 = vrot.lane.b32.xlu1 %v1128_v0, %s1077_s20  ;;  %v1135_v3 = vld [vmem:[%s228_s19 + $0x8] ss:$16 sps:$4 sm:$0xff]   ;;  %283 = vrot.lane.b32.xlu0 %v1131_v1, %s1077_s20 }
  0x16   : > { %281 = vrot.lane.b32.xlu1 %v1133_v2, %s1077_s20  ;;  %285 = vrot.lane.b32.xlu0 %v1135_v3, %s1077_s20 }
  0x1a   : > { %300 = vrot.lane.b32.xlu1 %v1135_v3, %s1078_s21  ;;  %298 = vrot.lane.b32.xlu0 %v1131_v1, %s1078_s21 }
  0x1e   : > { %296 = vrot.lane.b32.xlu1 %v1133_v2, %s1078_s21  ;;  %302 = vrot.lane.b32.xlu0 %v1128_v0, %s1078_s21 }
  0x22   : > { %325 = vrot.lane.b32.xlu1 %v1135_v3, %s1079_s22  ;;  %323 = vrot.lane.b32.xlu0 %v1131_v1, %s1079_s22 }
  0x26   : > { %327 = vrot.lane.b32.xlu1 %v1128_v0, %s1079_s22  ;;  %321 = vrot.lane.b32.xlu0 %v1133_v2, %s1079_s22 }
  0x84   : > { %v288_v5 = vpop.permute.xlu1 %287  ;;  %v284_v6 = vpop.permute.xlu0 %283 }
  0x85   : > { %335 = vrot.lane.b32.xlu1 %v288_v5, %s1079_s22 }
  0x88   : > { %v282_v7 = vpop.permute.xlu1 %281  ;;  %v286_v8 = vpop.permute.xlu0 %285 }
  0x89   : > { %v1154_v10 = vsel %vm289_vm0, %v284_v6, %v286_v8  ;;  %v1156_v11 = vsel %vm289_vm0, %v286_v8, %v288_v5  ;;  %v1165_v15 = vsel %vm289_vm0, %v282_v7, %v284_v6 }
  0x8a   : > { %331 = vrot.lane.b32.xlu0 %v1154_v10, %s1079_s22  ;;  %333 = vrot.lane.b32.xlu1 %v1156_v11, %s1079_s22 }
  0x8c   : > { %v301_v9 = vpop.permute.xlu1 %300  ;;  %v299_v13 = vpop.permute.xlu0 %298 }
  0x8d   : > { %v1169_v16 = vsel %vm304_vm2, %v299_v13, %v301_v9 }
  0x8e   : > { %329 = vrot.lane.b32.xlu0 %v1165_v15, %s1079_s22 }
  0x90   : > { %v297_v14 = vpop.permute.xlu1 %296  ;;  %v303_v17 = vpop.permute.xlu0 %302 }
  0x91   : > { %v1171_v19 = vsel %vm304_vm2, %v301_v9, %v303_v17  ;;  %v1177_v22 = vsel %vm304_vm2, %v297_v14, %v299_v13 }
  0x92   : > { %341 = vrot.lane.b32.xlu1 %v1171_v19, %s1079_s22  ;;  %339 = vrot.lane.b32.xlu0 %v1169_v16, %s1079_s22 }
  0x94   : > { %v326_v18 = vpop.permute.xlu1 %325  ;;  %v324_v20 = vpop.permute.xlu0 %323 }
  0x95   : > { %v347_v23 = vsel %vm345_vm3, %v324_v20, %v326_v18 }
  0x96   : > { %343 = vrot.lane.b32.xlu1 %v303_v17, %s1079_s22  ;;  %337 = vrot.lane.b32.xlu0 %v1177_v22, %s1079_s22 }
  0x97   : > { %368 = vmatprep.subr.bf16.mxu0 %v347_v23 }
  0x98   : > { %v328_v21 = vpop.permute.xlu1 %327  ;;  %v322_v25 = vpop.permute.xlu0 %321 }
  0x99   : > { %v348_v24 = vsel %vm345_vm3, %v326_v18, %v328_v21  ;;  %v346_v26 = vsel %vm345_vm3, %v322_v25, %v324_v20 }
  0x9a   : > { %963 = vmatpush3.bf16.msra.mxu1 %v348_v24  ;;  %556 = vrot.lane.b32.xlu1 %v1135_v3, %s1083_s23 }
  0x9b   : > { %964 = vmatprep.subr.bf16.mxu1 %v1080_v4  ;;  %554 = vrot.lane.b32.xlu0 %v1131_v1, %s1083_s23 }
  0x9c   : > { %369 = vmatpush1.bf16.msra.mxu0 %v346_v26 }
  0x9e   : > { %558 = vrot.lane.b32.xlu1 %v1128_v0, %s1083_s23  ;;  %v1048_v0 = vld [vmem:[%s1285_s1 + $0x10] sm:$0xff]  }
  0x9f   : > { %552 = vrot.lane.b32.xlu0 %v1133_v2, %s1083_s23 }
  0xa2   : > { %566 = vrot.lane.b32.xlu1 %v288_v5, %s1083_s23 }
  0xa3   : > { %562 = vrot.lane.b32.xlu0 %v1154_v10, %s1083_s23 }
  0xa6   : > { %564 = vrot.lane.b32.xlu1 %v1156_v11, %s1083_s23 }
  0xa7   : > { %560 = vrot.lane.b32.xlu0 %v1165_v15, %s1083_s23 }
  0xaa   : > { %572 = vrot.lane.b32.xlu1 %v1171_v19, %s1083_s23 }
  0xab   : > { %570 = vrot.lane.b32.xlu0 %v1169_v16, %s1083_s23 }
  0xae   : > { %574 = vrot.lane.b32.xlu1 %v303_v17, %s1083_s23 }
  0xaf   : > { %568 = vrot.lane.b32.xlu0 %v1177_v22, %s1083_s23 }
  0xf7   : > { %v336_v27 = vpop.permute.xlu1 %335 }
  0xfc   : > { %v332_v28 = vpop.permute.xlu0 %331  ;;  %v334_v29 = vpop.permute.xlu1 %333 }
  0xfd   : > { %v350_v30 = vsel %vm345_vm3, %v332_v28, %v334_v29  ;;  %v351_v31 = vsel %vm345_vm3, %v334_v29, %v336_v27 }
  0xfe   : > { %370 = vmatprep.subr.bf16.mxu0 %v350_v30  ;;  %965 = vmatpush3.bf16.msra.mxu1 %v351_v31 }
  0xff   : > { %966 = vmatprep.subr.bf16.mxu1 %v1080_v4 }
 0x100   : > { %v330_v32 = vpop.permute.xlu0 %329 }
 0x101   : > { %v349_v33 = vsel %vm345_vm3, %v330_v32, %v332_v28 }
 0x102   : > { %371 = vmatpush1.bf16.msra.mxu0 %v349_v33 }
 0x104   : > { %v340_v34 = vpop.permute.xlu0 %339  ;;  %v342_v35 = vpop.permute.xlu1 %341 }
 0x105   : > { %v353_v36 = vsel %vm345_vm3, %v340_v34, %v342_v35 }
 0x106   : > { %372 = vmatprep.subr.bf16.mxu0 %v353_v36 }
 0x108   : > { %v338_v37 = vpop.permute.xlu0 %337  ;;  %v344_v38 = vpop.permute.xlu1 %343 }
 0x109   : > { %v352_v39 = vsel %vm345_vm3, %v338_v37, %v340_v34  ;;  %v354_v40 = vsel %vm345_vm3, %v342_v35, %v344_v38 }
 0x10a   : > { %373 = vmatpush1.bf16.msra.mxu0 %v352_v39  ;;  %967 = vmatpush3.bf16.msra.mxu1 %v354_v40 }
 0x10b   : > { %460 = vmatprep.subr.bf16.mxu0 %v1131_v1  ;;  %972 = vmatprep.subr.bf16.mxu1 %v1080_v4  ;;  %v688_v1 = vlaneseq }
 0x10c   : > { %v557_v43 = vpop.permute.xlu1 %556 }
 0x10d   : > { %v555_v42 = vpop.permute.xlu0 %554  ;;  %937 = vmatmul.mubr.msk.bf16.vlgmr.msra.gmra.mrb[0].mxu0 %vm364_vm4, %v1046_v41  ;;  %969 = vmatmul.mubr.msk.bf16.vlgmr.msra.gmra.mrb[0].mxu1 %vm364_vm4, %v1046_v41 }
 0x10e   : > { %461 = vmatpush1.bf16.msra.mxu0 %v1133_v2  ;;  %973 = vmatpush3.bf16.msra.mxu1 %v1135_v3  ;;  %v578_v49 = vsel %vm576_vm5, %v555_v42, %v557_v43  ;;  %v689_v2 = vand.u32 127, %v688_v1 }
 0x10f   : > { %462 = vmatprep.subr.bf16.mxu0 %v1154_v10  ;;  %974 = vmatprep.subr.bf16.mxu1 %v1080_v4 }
 0x110   : > { %v559_v45 = vpop.permute.xlu1 %558  ;;  %492 = vmatprep.mubr.bf16.mxu0 %v1081_v12  ;;  %978 = vmatprep.mubr.msk.bf16.mxu1 %vm1082_vm1, %v1080_v4  ;;  %v691_v3 = vadd.s32 256, %v689_v2  ;;  %v692_v5 = vcvt.s32.f32 %v689_v2 }
 0x111   : > { %v553_v44 = vpop.permute.xlu0 %552  ;;  %v579_v53 = vsel %vm576_vm5, %v557_v43, %v559_v45 }
 0x112   : > { %463 = vmatpush1.bf16.msra.mxu0 %v1165_v15  ;;  %975 = vmatpush3.bf16.msra.mxu1 %v1156_v11  ;;  %v577_v52 = vsel %vm576_vm5, %v553_v44, %v555_v42  ;;  %v694_v6 = vcvt.s32.f32 %v691_v3  ;;  %v695_v8 = vadd.f32 0.5, %v692_v5  ;;  %vm715_vm8 = vcmp.lt.s32.totalorder %v691_v3, 288 }
 0x113   : > { %464 = vmatprep.subr.bf16.mxu0 %v1169_v16  ;;  %976 = vmatprep.subr.bf16.mxu1 %v1080_v4 }
 0x114   : > { %v567_v47 = vpop.permute.xlu1 %566  ;;  %v697_v9 = vadd.f32 0.5, %v694_v6  ;;  %v698_v11 = vmul.f32 0.055555556, %v695_v8 }
 0x115   : > { %v563_v46 = vpop.permute.xlu0 %562 }
 0x116   : > { %465 = vmatpush1.bf16.msra.mxu0 %v1177_v22  ;;  %977 = vmatpush3.bf16.msra.mxu1 %v1171_v19  ;;  %v701_v14 = vfloor.f32 %v698_v11  ;;  %v779_v11 = vld [vmem:[%s244_s6] sm:$0xff] }
 0x117   : > { %598 = vmatprep.subr.bf16.mxu0 %v578_v49  ;;  %982 = vmatprep.subr.bf16.mxu1 %v1080_v4 }
 0x118   : > { %v565_v51 = vpop.permute.xlu1 %564  ;;  %v704_v17 = vmul.f32 18.0, %v701_v14 }
 0x119   : > { %v561_v50 = vpop.permute.xlu0 %560  ;;  %940 = vmatmul.mubr.msk.bf16.vlgmr.msra.gmra.mrb[0].mxu0 %vm364_vm4, %v1047_v48  ;;  %979 = vmatmul.mubr.msk.bf16.vlgmr.msra.gmra.mrb[0].mxu1 %vm364_vm4, %v1047_v48  ;;  %v581_v54 = vsel %vm576_vm5, %v563_v46, %v565_v51  ;;  %v582_v58 = vsel %vm576_vm5, %v565_v51, %v567_v47 }
 0x11a   : > { %599 = vmatpush1.bf16.msra.mxu0 %v577_v52  ;;  %983 = vmatpush3.bf16.msra.mxu1 %v579_v53  ;;  %v580_v57 = vsel %vm576_vm5, %v561_v50, %v563_v46  ;;  %v707_v20 = vsub.f32 %v692_v5, %v704_v17 }
 0x11b   : > { %600 = vmatprep.subr.bf16.mxu0 %v581_v54  ;;  %984 = vmatprep.subr.bf16.mxu1 %v1080_v4 }
 0x11c   : > { %v573_v56 = vpop.permute.xlu1 %572  ;;  %630 = vmatprep.mubr.bf16.mxu0 %v1081_v12  ;;  %988 = vmatprep.mubr.msk.bf16.mxu1 %vm1082_vm1, %v1080_v4  ;;  %v700_v12 = vmul.f32 0.055555556, %v697_v9  ;;  %vm710_vm6 = vcmp.lt.f32.partialorder %v707_v20, 16.0 }
 0x11d   : > { %v571_v55 = vpop.permute.xlu0 %570 }
 0x11e   : > { %v584_v59 = vsel %vm576_vm5, %v571_v55, %v573_v56  ;;  %601 = vmatpush1.bf16.msra.mxu0 %v580_v57  ;;  %985 = vmatpush3.bf16.msra.mxu1 %v582_v58  ;;  %v703_v15 = vfloor.f32 %v700_v12  ;;  %v780_v12 = vld [vmem:[%s244_s6 + $0x8] sm:$0xff] }
 0x11f   : > { %602 = vmatprep.subr.bf16.mxu0 %v584_v59  ;;  %986 = vmatprep.subr.bf16.mxu1 %v1080_v4  ;;  %v690_v4 = vadd.s32 128, %v689_v2 }
 0x120   : > { %v575_v61 = vpop.permute.xlu1 %574  ;;  %v706_v18 = vmul.f32 18.0, %v703_v15 }
 0x121   : > { %v569_v60 = vpop.permute.xlu0 %568  ;;  %v585_v63 = vsel %vm576_vm5, %v573_v56, %v575_v61  ;;  %v693_v7 = vcvt.s32.f32 %v690_v4 }
 0x122   : > { %v583_v62 = vsel %vm576_vm5, %v569_v60, %v571_v55  ;;  %987 = vmatpush3.bf16.msra.mxu1 %v585_v63  ;;  %v709_v21 = vsub.f32 %v694_v6, %v706_v18 }
 0x123   : > { %603 = vmatpush1.bf16.msra.mxu0 %v583_v62  ;;  %v696_v10 = vadd.f32 0.5, %v693_v7 }
 0x124   : > { %vm712_vm7 = vcmp.lt.f32.partialorder %v709_v21, 16.0  ;;  %v782_v21 = vld [vmem:[%s244_s6 + $0x18] sm:$0xff] }
 0x125   : > { %989 = vmatmul.mubr.msk.bf16.vlgmr.msra.gmra.mrb[0].mxu1 %vm364_vm4, %v1048_v0  ;;  %v699_v13 = vmul.f32 0.055555556, %v696_v10  ;;  %vm1249_vm10 = vmand %vm712_vm7, %vm715_vm8 }
 0x126   : > { %945 = vmatmul.mubr.msk.bf16.vlgmr.msra.gmra.mrb[0].mxu0 %vm364_vm4, %v1048_v0 }
 0x127   : > { %v702_v16 = vfloor.f32 %v699_v13  ;;  %v781_v13 = vld [vmem:[%s244_s6 + $0x10] sm:$0xff] }
 0x129   : > { %v705_v19 = vmul.f32 18.0, %v702_v16 }
 0x12b   : > { %v708_v22 = vsub.f32 %v693_v7, %v705_v19 }
 0x12d   : > { %vm711_vm9 = vcmp.lt.f32.partialorder %v708_v22, 16.0  ;;  %v783_v22 = vld [vmem:[%s244_s6 + $0x20] sm:$0xff] }
 0x1f8   : > { %v675_v24 = vpop.f32.mrb[0].mxu1 }
 0x1f9   : > { %v632_v23 = vpop.f32.mrb[0].mxu0  ;;  %v990_v28 = vpop.f32.mrb[1].mxu1  ;;  %v727_v36 = vsel %vm1249_vm10, %v675_v24, 0.0 }
 0x1fa   : > { %v725_v25 = vsel %vm710_vm6, %v632_v23, 0.0  ;;  %v634_v27 = vpop.f32.mrb[1].mxu0  ;;  %v678_v31 = vpop.f32.mrb[2].mxu1 }
 0x1fb   : > { %v726_v29 = vsel %vm711_vm9, %v634_v27, 0.0  ;;  %v636_v30 = vpop.f32.mrb[2].mxu0  ;;  %v991_v35 = vpop.f32.mrb[3].mxu1  ;;  %v730_v40 = vsel %vm1249_vm10, %v678_v31, 0.0 }
 0x1fc   : > { %v731_v32 = vadd.f32 %v726_v29, %v725_v25  ;;  %v728_v33 = vsel %vm710_vm6, %v636_v30, 0.0  ;;  %v638_v34 = vpop.f32.mrb[3].mxu0 }
 0x1fd   : > { %v729_v37 = vsel %vm711_vm9, %v638_v34, 0.0 }
 0x1fe   : > { %v735_v38 = vadd.f32 %v729_v37, %v728_v33  ;;  %v732_v39 = vadd.f32 %v731_v32, %v727_v36 }
 0x200   : > { %733 = vadd.xlane.f32.xlu0 %v732_v39  ;;  %v736_v41 = vadd.f32 %v735_v38, %v730_v40 }
 0x202   : > { %737 = vadd.xlane.f32.xlu1 %v736_v41 }
 0x28d   : > { %v734_v42 = vpop.xlane.xlu0 %733 }
 0x28e   : > { %v739_v43 = vmul.f32 0.00390625, %v734_v42 }
 0x28f   : > { %v738_v44 = vpop.xlane.xlu1 %737 }
 0x290   : > { %v741_v45 = vsub.f32 %v632_v23, %v739_v43  ;;  %v742_v46 = vsub.f32 %v634_v27, %v739_v43  ;;  %v743_v47 = vsub.f32 %v675_v24, %v739_v43  ;;  %v740_v48 = vmul.f32 0.00390625, %v738_v44  ;;  %v784_v23 = vld [vmem:[%s244_s6 + $0x28] sm:$0xff] }
 0x292   : > { %v744_v49 = vsub.f32 %v636_v30, %v740_v48  ;;  %v745_v50 = vsub.f32 %v638_v34, %v740_v48  ;;  %v747_v51 = vmul.f32 %v741_v45, %v741_v45  ;;  %v746_v52 = vsub.f32 %v678_v31, %v740_v48 }
 0x293   : > { %v748_v53 = vmul.f32 %v742_v46, %v742_v46  ;;  %v749_v54 = vmul.f32 %v743_v47, %v743_v47 }
 0x294   : > { %v750_v55 = vmul.f32 %v744_v49, %v744_v49  ;;  %v751_v56 = vmul.f32 %v745_v50, %v745_v50  ;;  %v753_v57 = vsel %vm710_vm6, %v747_v51, 0.0  ;;  %v752_v63 = vmul.f32 %v746_v52, %v746_v52 }
 0x295   : > { %v754_v58 = vsel %vm711_vm9, %v748_v53, 0.0  ;;  %v755_v62 = vsel %vm1249_vm10, %v749_v54, 0.0 }
 0x296   : > { %v759_v59 = vadd.f32 %v754_v58, %v753_v57  ;;  %v756_v60 = vsel %vm710_vm6, %v750_v55, 0.0  ;;  %v757_v61 = vsel %vm711_vm9, %v751_v56, 0.0  ;;  %v758_v2 = vsel %vm1249_vm10, %v752_v63, 0.0 }
 0x297   : > { %v763_v1 = vadd.f32 %v757_v61, %v756_v60 }
 0x298   : > { %v760_v0 = vadd.f32 %v759_v59, %v755_v62 }
 0x299   : > { %v764_v3 = vadd.f32 %v763_v1, %v758_v2 }
 0x29a   : > { %761 = vadd.xlane.f32.xlu0 %v760_v0 }
 0x29e   : > { %765 = vadd.xlane.f32.xlu0 %v764_v3 }
 0x327   : > { %v762_v4 = vpop.xlane.xlu0 %761 }
 0x328   : > { %v767_v5 = vmul.f32 0.00390625, %v762_v4 }
 0x32a   : > { %v769_v6 = vadd.f32 1e-05, %v767_v5 }
 0x32b   : > { %v766_v7 = vpop.xlane.xlu0 %765 }
 0x32c   : > { %1049 = vrsqrt.f32 %v769_v6  ;;  %v768_v8 = vmul.f32 0.00390625, %v766_v7 }
 0x32e   : > { %v770_v9 = vadd.f32 1e-05, %v768_v8 }
 0x330   : > { %1051 = vrsqrt.f32 %v770_v9 }
 0x336   : > { %v1050_v10 = vpop.eup %1049 }
 0x337   : > { %v773_v14 = vmul.f32 %v1050_v10, %v741_v45  ;;  %v774_v15 = vmul.f32 %v1050_v10, %v742_v46  ;;  %v775_v16 = vmul.f32 %v1050_v10, %v743_v47 }
 0x339   : > { %v785_v17 = vadd.f32 %v779_v11, %v773_v14  ;;  %v786_v18 = vadd.f32 %v780_v12, %v774_v15  ;;  %v787_v19 = vadd.f32 %v781_v13, %v775_v16 }
 0x33a   : > { %v1052_v20 = vpop.eup %1051 }
 0x33b   : > { %791 = vst [vmem:[%s255_s9] sm:$0xff] %v785_v17  ;;  %792 = vst [vmem:[%s255_s9 + $0x8] sm:$0xff] %v786_v18  ;;  %v776_v24 = vmul.f32 %v1052_v20, %v744_v49  ;;  %v777_v25 = vmul.f32 %v1052_v20, %v745_v50  ;;  %v778_v26 = vmul.f32 %v1052_v20, %v746_v52 }
 0x33c   : > { %793 = vst [vmem:[%s255_s9 + $0x10] sm:$0xff] %v787_v19 }
 0x33d   : > { %v788_v27 = vadd.f32 %v782_v21, %v776_v24  ;;  %v789_v28 = vadd.f32 %v783_v22, %v777_v25  ;;  %v790_v29 = vadd.f32 %v784_v23, %v778_v26 }
 0x33f   : > { %794 = vst [vmem:[%s255_s9 + $0x18] sm:$0xff] %v788_v27  ;;  %795 = vst [vmem:[%s255_s9 + $0x20] sm:$0xff] %v789_v28 }
 0x340   : > { %796 = vst [vmem:[%s255_s9 + $0x28] sm:$0xff] %v790_v29 }
 0x341 PF: > { %s13_s14 = sadd.s32 1, %s1075_s14   ;;  %s1290_s12 = smov %s1071_s13 }
 0x342   : > { %p10_p5 = scmp.ge.s32.totalorder %s13_s14, 4   ;;  %s1291_s13 = smov %s1293_s15 }
 0x344   :  { %12 = sbr.rel (!%p10_p5) target bundleno = 2 (0x2), region = 70 }

</bundles_post_ra>
